<compile_context>
chip_gen: v7x
topology: tpu7x:2x2x1
jax: 0.10.0
libtpu: 0.0.40
codegen_flags: <defaults>
</compile_context>

<pallas_src>
import jax
import jax.numpy as jnp
from jax.experimental import pallas as pl
from jax.experimental.pallas import tpu as pltpu


def _round_up(x, m):
    return ((x + m - 1) // m) * m


def _choose_tile_rows(n, c, itemsize):
    """Rows per tile derived from the *lane-padded* VMEM working-set size.

    Accounts for what actually lands in VMEM (last dim padded to 128 lanes):
      - logits block:  rows * round_up(C,128) * itemsize, double-buffered
      - f32 target col: rows * 128 * 4 B, double-buffered
      - ~3 tile-sized f32 intermediates (astype / exp / where chain)
    Total working set capped at ~12 MiB: safe under v5e's 16 MiB scoped
    default and v7x's 64 MiB physical VMEM, while tiles stay large enough
    (>= ~1-2 MiB logits buffers) to sit near the HBM roofline.
    """
    lanes = _round_up(c, 128)
    per_row = (2 * lanes * itemsize      # logits block, double-buffered
               + 2 * 128 * 4             # lane-padded f32 target column, double-buffered
               + 3 * lanes * 4)          # f32 intermediates inside the kernel
    budget = 12 * 1024 * 1024
    rows = max(1, budget // per_row)
    if rows >= n:
        return n, 1                      # single tile: block dims equal full array dims
    # Multiple of 128: satisfies sublane packing for every dtype and makes the
    # lane-dense (1, tile_rows) output blocks legal (last dim % 128 == 0).
    rows = max(128, (rows // 128) * 128)
    # TODO(synk): for very large C the 128-row floor can exceed the budget; the
    # class dimension would need its own tiling pass there.
    return rows, pl.cdiv(n, rows)


def _per_row_focal(x_raw, tgt_raw, alpha, gamma, row_offset, n_valid):
    """Focal loss for each row of a (TM, C) tile; rows >= n_valid zeroed."""
    x = x_raw.astype(jnp.float32)
    tgt = tgt_raw.astype(jnp.float32)                        # (TM, 1) target logit
    tm = x.shape[0]
    m = jnp.max(x, axis=-1, keepdims=True)                   # (TM, 1)
    s = jnp.sum(jnp.exp(x - m), axis=-1, keepdims=True)      # (TM, 1)  exp on EUP
    ce = jnp.maximum(jnp.log(s) + m - tgt, 0.0)              # clamp f32 rounding
    pt = jnp.exp(-ce)
    one_minus_pt = jnp.maximum(1.0 - pt, 0.0)
    if float(gamma) == int(gamma) and gamma >= 0:
        # exact repeated multiply for integer gamma (never jnp.power here)
        mod = jnp.ones_like(one_minus_pt)
        for _ in range(int(gamma)):
            mod = mod * one_minus_pt
    else:
        mod = jnp.power(one_minus_pt, gamma)
    focal = alpha * mod * ce                                  # (TM, 1)
    row = jax.lax.broadcasted_iota(jnp.int32, (tm, 1), 0) + row_offset
    return jnp.where(row < n_valid, focal, 0.0)


def _make_reduce_kernel(alpha, gamma, tile_rows, tiles_per_core, n_valid):
    def kernel(x_ref, t_ref, out_ref):
        g = pl.program_id(0)           # core/partial axis ("parallel")
        j = pl.program_id(1)           # row-tile axis ("arbitrary")

        @pl.when(j == 0)
        def _():
            out_ref[...] = jnp.zeros_like(out_ref)

        row_offset = (g * tiles_per_core + j) * tile_rows
        focal = _per_row_focal(x_ref[...], t_ref[...], alpha, gamma,
                               row_offset, n_valid)
        # Broadcast the tile's partial sum over the resident (1, 8, 128) block.
        out_ref[...] += jnp.sum(focal)

    return kernel


def _make_rowwise_kernel(alpha, gamma, tile_rows, n_valid):
    def kernel(x_ref, t_ref, o_ref):
        i = pl.program_id(0)
        focal = _per_row_focal(x_ref[...], t_ref[...], alpha, gamma,
                               i * tile_rows, n_valid)        # (TM, 1)
        # Lane-dense store: one XLU transpose per tile, unmasked vector stores.
        o_ref[...] = jnp.transpose(focal, (1, 0))             # (1, TM)

    return kernel


def focal_loss(inputs, targets, alpha=1.0, gamma=2.0, reduction="mean"):
    """Pallas TPU equivalent of FocalLoss.forward(inputs, targets).

    inputs:  (N, C) logits
    targets: (N,)   integer class labels
    """
    assert inputs.ndim == 2 and targets.ndim == 1 and targets.shape[0] == inputs.shape[0]
    # TODO(synk): per-class alpha tensor (docstring allows it); scalar alpha matches forward().
    n, c = inputs.shape
    itemsize = jnp.dtype(inputs.dtype).itemsize

    # Gather the target logit once in the wrapper (an O(N) gather, not an extra
    # pass over the (N,C) logits). The kernel streams this f32 column and needs
    # no int targets / iota / one-hot select over the (TM, C) tile.
    tgt = jnp.take_along_axis(
        inputs, targets.astype(jnp.int32)[:, None], axis=1).astype(jnp.float32)  # (N, 1)

    tile_rows, n_tiles = _choose_tile_rows(n, c, itemsize)

    cost = pl.CostEstimate(
        flops=4 * n * c + 12 * n,
        transcendentals=n * c + 2 * n,
        bytes_accessed=n * c * itemsize + n * 4 + (n * 4 if reduction == "none" else 8 * 1024),
    )

    if reduction in ("mean", "sum"):
        # Leading size-2 "parallel" axis: on v7x both TensorCores each own a
        # resident (1, 8, 128) partial-sum block; inner row axis is "arbitrary".
        tiles_per_core = pl.cdiv(n_tiles, 2)

        def in_index(g, j):
            # Clamp so a core's trailing (empty) step re-reads a valid block;
            # the kernel's row-offset mask zeroes its contribution.
            return (jnp.minimum(g * tiles_per_core + j, n_tiles - 1), 0)

        out = pl.pallas_call(
            _make_reduce_kernel(alpha, gamma, tile_rows, tiles_per_core, n),
            out_shape=jax.ShapeDtypeStruct((2, 8, 128), jnp.float32),
            grid=(2, tiles_per_core),
            in_specs=[
                pl.BlockSpec((tile_rows, c), in_index),
                pl.BlockSpec((tile_rows, 1), in_index),
            ],
            out_specs=pl.BlockSpec((1, 8, 128), lambda g, j: (g, 0, 0)),
            compiler_params=pltpu.CompilerParams(
                dimension_semantics=("parallel", "arbitrary"),
                vmem_limit_bytes=32 * 1024 * 1024),
            cost_estimate=cost,
        )(inputs, tgt)
        total = out[0, 0, 0] + out[1, 0, 0]
        if reduction == "mean":
            return total / n
        return total

    elif reduction == "none":
        padded = n_tiles * tile_rows
        out = pl.pallas_call(
            _make_rowwise_kernel(alpha, gamma, tile_rows, n),
            out_shape=jax.ShapeDtypeStruct((1, padded), jnp.float32),
            grid=(n_tiles,),
            in_specs=[
                pl.BlockSpec((tile_rows, c), lambda i: (i, 0)),
                pl.BlockSpec((tile_rows, 1), lambda i: (i, 0)),
            ],
            out_specs=pl.BlockSpec((1, tile_rows), lambda i: (0, i)),
            compiler_params=pltpu.CompilerParams(
                dimension_semantics=("parallel",),
                vmem_limit_bytes=32 * 1024 * 1024),
            cost_estimate=cost,
        )(inputs, tgt)
        return out[0, :n]

    else:
        raise ValueError(f"unknown reduction: {reduction!r}")


def _focal_loss_ref(inputs, targets, alpha=1.0, gamma=2.0, reduction="mean"):
    """Pure-JAX reference mirroring the PyTorch module."""
    x = inputs.astype(jnp.float32)
    lse = jax.scipy.special.logsumexp(x, axis=-1)
    t = jnp.take_along_axis(x, targets[:, None].astype(jnp.int32), axis=-1)[:, 0]
    ce = lse - t
    pt = jnp.exp(-ce)
    fl = alpha * (1.0 - pt) ** gamma * ce
    if reduction == "mean":
        return fl.mean()
    if reduction == "sum":
        return fl.sum()
    return fl


if __name__ == "__main__":
    key = jax.random.PRNGKey(0)
    k1, k2 = jax.random.split(key)
    # Small (N, C) logits + (N,) labels; N deliberately not tile-aligned.
    N, C = 70, 10
    logits = jax.random.normal(k1, (N, C), dtype=jnp.float32) * 2.0
    labels = jax.random.randint(k2, (N,), 0, C, dtype=jnp.int32)

    ok = True
    for red in ("mean", "sum", "none"):
        got = focal_loss(logits, labels, alpha=1.0, gamma=2.0, reduction=red)
        got = jax.block_until_ready(got)
        want = _focal_loss_ref(logits, labels, alpha=1.0, gamma=2.0, reduction=red)
        ok = ok and bool(jnp.allclose(got, want, rtol=1e-5, atol=1e-5))

    assert ok, "Pallas focal loss does not match reference"
    print("KERNEL_OK")
</pallas_src>

<mosaic_0001>
module attributes {stable_mosaic.version = 11 : i64} {
  func.func @kernel(%arg0: i32, %arg1: i32, %arg2: memref<70x10xf32, #tpu.memory_space<vmem>>, %arg3: memref<70x1xf32, #tpu.memory_space<vmem>>, %arg4: memref<1x8x128xf32, #tpu.memory_space<vmem>>) attributes {dimension_semantics = [#tpu.dimension_semantics<parallel>, #tpu.dimension_semantics<arbitrary>], iteration_bounds = array<i64: 2, 1>, scalar_prefetch = 0 : i64, scratch_operands = 0 : i64, tpu.core_type = #tpu.core_type<tc>, window_params = [{transform_indices = @transform_0, window_bounds = array<i64: 70, 10>}, {transform_indices = @transform_1, window_bounds = array<i64: 70, 1>}, {transform_indices = @transform_2, window_bounds = array<i64: 1, 8, 128>}]} {
    %c0_i32 = arith.constant 0 : i32
    %0 = arith.cmpi eq, %arg1, %c0_i32 : i32
    %1 = arith.extui %0 : i1 to i32
    %c0_i32_0 = arith.constant 0 : i32
    %2 = arith.cmpi ne, %1, %c0_i32_0 : i32
    scf.if %2 {
      %cst_20 = arith.constant 0.000000e+00 : f32
      %48 = vector.broadcast %cst_20 : f32 to vector<1x8x128xf32>
      %c0_21 = arith.constant 0 : index
      %c0_22 = arith.constant 0 : index
      %c0_23 = arith.constant 0 : index
      %49 = vector.load %arg4[%c0_21, %c0_22, %c0_23] : memref<1x8x128xf32, #tpu.memory_space<vmem>>, vector<1x8x128xf32>
      tpu.vector_store %arg4[%c0_21, %c0_22, %c0_23], %48 {strides = array<i32>} : memref<1x8x128xf32, #tpu.memory_space<vmem>>, vector<1x8x128xf32>,
    } else {
    }
    %c1_i32 = arith.constant 1 : i32
    %3 = arith.muli %arg0, %c1_i32 : i32
    %4 = arith.addi %3, %arg1 : i32
    %c70_i32 = arith.constant 70 : i32
    %5 = arith.muli %4, %c70_i32 : i32
    %c0 = arith.constant 0 : index
    %c0_1 = arith.constant 0 : index
    %6 = vector.load %arg2[%c0, %c0_1] : memref<70x10xf32, #tpu.memory_space<vmem>>, vector<70x10xf32>
    %c0_2 = arith.constant 0 : index
    %c0_3 = arith.constant 0 : index
    %7 = vector.load %arg3[%c0_2, %c0_3] : memref<70x1xf32, #tpu.memory_space<vmem>>, vector<70x1xf32>
    %cst = arith.constant dense<0xFF800000> : vector<70xf32>
    %8 = vector.multi_reduction <maximumf>, %6, %cst [1] : vector<70x10xf32> to vector<70xf32>
    %9 = vector.shape_cast %8 : vector<70xf32> to vector<70x1xf32>
    %10 = vector.broadcast %9 : vector<70x1xf32> to vector<70x10xf32>
    %11 = arith.subf %6, %10 : vector<70x10xf32>
    %12 = math.exp %11 : vector<70x10xf32>
    %cst_4 = arith.constant dense<0.000000e+00> : vector<70xf32>
    %13 = vector.multi_reduction <add>, %12, %cst_4 [1] : vector<70x10xf32> to vector<70xf32>
    %14 = vector.shape_cast %13 : vector<70xf32> to vector<70x1xf32>
    %15 = math.log %14 : vector<70x1xf32>
    %16 = arith.addf %15, %9 : vector<70x1xf32>
    %17 = arith.subf %16, %7 : vector<70x1xf32>
    %cst_5 = arith.constant 0.000000e+00 : f32
    %18 = vector.broadcast %cst_5 : f32 to vector<70x1xf32>
    %19 = arith.maximumf %17, %18 : vector<70x1xf32>
    %cst_6 = arith.constant 0.000000e+00 : f32
    %20 = vector.broadcast %cst_6 : f32 to vector<70x1xf32>
    %21 = arith.subf %20, %19 : vector<70x1xf32>
    %22 = math.exp %21 : vector<70x1xf32>
    %cst_7 = arith.constant 1.000000e+00 : f32
    %23 = vector.broadcast %cst_7 : f32 to vector<70x1xf32>
    %24 = arith.subf %23, %22 : vector<70x1xf32>
    %cst_8 = arith.constant 0.000000e+00 : f32
    %25 = vector.broadcast %cst_8 : f32 to vector<70x1xf32>
    %26 = arith.maximumf %24, %25 : vector<70x1xf32>
    %cst_9 = arith.constant 1.000000e+00 : f32
    %27 = vector.broadcast %cst_9 : f32 to vector<70x1xf32>
    %28 = arith.mulf %27, %26 : vector<70x1xf32>
    %29 = arith.mulf %28, %26 : vector<70x1xf32>
    %cst_10 = arith.constant 1.000000e+00 : f32
    %30 = vector.broadcast %cst_10 : f32 to vector<70x1xf32>
    %31 = arith.mulf %30, %29 : vector<70x1xf32>
    %32 = arith.mulf %31, %19 : vector<70x1xf32>
    %33 = tpu.iota {dimensions = array<i32: 0>} : vector<70x1xi32>
    %34 = vector.broadcast %5 : i32 to vector<70x1xi32>
    %35 = arith.addi %33, %34 : vector<70x1xi32>
    %c70_i32_11 = arith.constant 70 : i32
    %36 = vector.broadcast %c70_i32_11 : i32 to vector<70x1xi32>
    %37 = arith.cmpi slt, %35, %36 : vector<70x1xi32>
    %cst_12 = arith.constant 0.000000e+00 : f32
    %38 = vector.broadcast %cst_12 : f32 to vector<70x1xf32>
    %39 = arith.select %37, %32, %38 : vector<70x1xi1>, vector<70x1xf32>
    %c0_13 = arith.constant 0 : index
    %c0_14 = arith.constant 0 : index
    %c0_15 = arith.constant 0 : index
    %40 = vector.load %arg4[%c0_13, %c0_14, %c0_15] : memref<1x8x128xf32, #tpu.memory_space<vmem>>, vector<1x8x128xf32>
    %41 = vector.shape_cast %39 : vector<70x1xf32> to vector<1x70x1xf32>
    %cst_16 = arith.constant dense<0.000000e+00> : vector<1xf32>
    %42 = vector.multi_reduction <add>, %41, %cst_16 [1, 2] : vector<1x70x1xf32> to vector<1xf32>
    %43 = vector.shape_cast %42 : vector<1xf32> to vector<1x1x1xf32>
    %44 = vector.extract %43[0, 0, 0] : f32 from vector<1x1x1xf32>
    %45 = vector.broadcast %44 : f32 to vector<1x8x128xf32>
    %46 = arith.addf %40, %45 : vector<1x8x128xf32>
    %c0_17 = arith.constant 0 : index
    %c0_18 = arith.constant 0 : index
    %c0_19 = arith.constant 0 : index
    %47 = vector.load %arg4[%c0_17, %c0_18, %c0_19] : memref<1x8x128xf32, #tpu.memory_space<vmem>>, vector<1x8x128xf32>
    tpu.vector_store %arg4[%c0_17, %c0_18, %c0_19], %46 {strides = array<i32>} : memref<1x8x128xf32, #tpu.memory_space<vmem>>, vector<1x8x128xf32>,
    return
  }
  func.func @transform_0(%arg0: i32, %arg1: i32) -> (i32, i32) {
    %c1_i32 = arith.constant 1 : i32
    %0 = arith.muli %arg0, %c1_i32 : i32
    %1 = arith.addi %0, %arg1 : i32
    %c0_i32 = arith.constant 0 : i32
    %2 = arith.minsi %1, %c0_i32 : i32
    %c0_i32_0 = arith.constant 0 : i32
    %c0_i32_1 = arith.constant 0 : i32
    return %2, %c0_i32_0 : i32, i32
  }
  func.func @transform_1(%arg0: i32, %arg1: i32) -> (i32, i32) {
    %c1_i32 = arith.constant 1 : i32
    %0 = arith.muli %arg0, %c1_i32 : i32
    %1 = arith.addi %0, %arg1 : i32
    %c0_i32 = arith.constant 0 : i32
    %2 = arith.minsi %1, %c0_i32 : i32
    %c0_i32_0 = arith.constant 0 : i32
    %c0_i32_1 = arith.constant 0 : i32
    return %2, %c0_i32_0 : i32, i32
  }
  func.func @transform_2(%arg0: i32, %arg1: i32) -> (i32, i32, i32) {
    %c0_i32 = arith.constant 0 : i32
    %c0_i32_0 = arith.constant 0 : i32
    %c0_i32_1 = arith.constant 0 : i32
    return %arg0, %c0_i32, %c0_i32_0 : i32, i32, i32
  }
}

</mosaic_0001>

<bundles_post_ra>
// kernel: tpu_custom_call.1
= control target key start
LH: loop header
LB: loop body
LE: loop exit
PB: predicated region body
PF: predicated region fallthrough
CT: control target
= control target key end

     0   :  { %7 = vsyncpa [#allocation3], 0  ;;  %s1069_s0 = inlined_call_operand.vmem [shape: f32[70,10], index: 0, kind: input, shape index: {}]   ;;  %s1070_s1 = inlined_call_operand.vmem [shape: f32[70,1], index: 1, kind: input, shape index: {}]   ;;  %s1071_s2 = inlined_call_operand.hbm [shape: f32[2,8,128], index: 2, kind: output, shape index: {}]  }
   0x1   :  { %9 = vsyncpa [#allocation3 + $0x1], 0  ;;  %s819_s9 = smov 0   ;;  %s821_s10 = smov 0  }
   0x2   :  { %s823_s11 = smov 0   ;;  %s825_s12 = smov 0  }
   0x3   :  { %s827_s13 = smov 0   ;;  %s829_s14 = smov 0  }
   0x4 LB: > { %s599_s15 = sadd.s32 4294967295, %s801_s14   ;;  %s600_s16 = sadd.s32 4294967294, %s801_s14   ;;  %s801_s14 = sphi %s829_s14, %s15_s14   ;;  %s797_s13 = sphi %s827_s13, %s1078_s13   ;;  %s793_s12 = sphi %s825_s12, %s1077_s12   ;;  %s789_s11 = sphi %s823_s11, %s1076_s11   ;;  %s785_s10 = sphi %s821_s10, %s1075_s10   ;;  %s781_s9 = sphi %s819_s9, %s1074_s9  }
   0x5   : > { %s27_s17 = sadd.s32 1, %s797_s13  ;;  %s98_s18 = sadd.s32 1, %s789_s11 }
   0x6   : > { %p29_p0 = scmp.ge.s32.totalorder %s27_s17, 2  ;;  %p108_p1 = scmp.ne.s32.totalorder %s789_s11, %s785_s10 }
   0x7   : > { %p109_p2 = scmp.eq.s32.totalorder %s599_s15, 1  ;;  %p114_p3 = scmp.ne.s32.totalorder %s785_s10, %s781_s9 }
   0x8   : > { %s1080_s17 = smov (%p29_p0, %s27_s17), 0  ;;  %p115_p5 = scmp.eq.s32.totalorder %s600_s16, 1 }
   0x9   : > { %p859_p4 = por %p109_p2, %p108_p1  ;;  %s95_s20 = ssub.s32 %s797_s13, %s1080_s17 }
   0xa   : > { %p603_p6 = scmp.ge.s32.totalorder %s801_s14, 1  ;;  %p96_p7 = scmp.eq.s32.totalorder %s95_s20, 0 }
   0xb   : > { %p866_p8 = por %p115_p5, %p114_p3  ;;  %p163_p9 = scmp.lt.s32.totalorder %s801_s14, 3 }
   0xc   : > { %s872_s22 = scalar_select %p96_p7, %s789_s11, %s98_s18  }
   0xd   : > { %p164_p10 = pnand %p603_p6, %p163_p9 }
   0xe   : > { %p197_p11 = scmp.lt.s32.totalorder (!%p164_p10), %s793_s12, 0  ;;  %vm245_vm0 = vcmask (!%p164_p10), 80896   ;;  %vm270_vm1 = vcmask (!%p164_p10), 78848   ;;  %s226_s4 = smul.u32 (!%p164_p10), 70, %s793_s12  ;;  %vm475_vm2 = vcmask (!%p164_p10), 7168   ;;  %vm491_vm12 = vcmask (!%p164_p10), 5120  }
   0xf   : > { %167 = sbr.rel (%p164_p10) target bundleno = 617 (0x269), region = 28  ;;  %s193_s5 = sand.u32 (!%p164_p10), 1, %s785_s10  }
  0x10   : > { %s604_s6 = sshll.u32 (!%p164_p10), %s193_s5, 3  ;;  %s608_s7 = sshll.u32 (!%p164_p10), %s793_s12, 7 }
  0x11   : > { %s195_s8 = scalar_lea.vmem (!%p164_p10), [#allocation2], %s604_s6 }
  0x12   : > { %s520_s15 = sshll.u32 (!%p164_p10), %s195_s8, 4  ;;  %s1024_s15 = int_to_ptr.vmem [resolvable:$true] %s520_s15 }
  0x16   : > { %s198_s23 = scalar_select %p197_p11, %s793_s12, 0 }
  0x17   : > { %s803_s12 = smov [#allocation2]  }
  0x18   : > { %s199_s24 = smul.u32 9, %s198_s23  ;;  %s1022_s23 = scalar_lea.hbm %s1071_s2, %s608_s7 }
  0x19   : > { %s727_s26 = sshll.u32 %s803_s12, 4  ;;  %s728_s26 = int_to_ptr.vmem [resolvable:$false] %s727_s26 }
  0x1a   : > { %p200_p12 = scmp.lt.s32.totalorder %s199_s24, 8  ;;  %s729_s27 = scalar_lea.vmem %s728_s26, 256 }
  0x1b   : > { %p730_p2 = scmp.lt.s32.totalorder %s1024_s15, %s728_s26 }
  0x1c   : > { %s1082_s24 = smov (!%p200_p12, %s199_s24), 8 }
  0x1d   : > { %s605_s25 = sshll.u32 %s1082_s24, 3  ;;  %s507_s24 = scalar_lea.sflag [#allocation3], %s193_s5 }
  0x1e   : > { %s203_s28 = scalar_lea.vmem %s1069_s0, %s605_s25  ;;  %s934_s3 = scalar_lea.vmem %s1070_s1, %s605_s25 }
  0x1f   : > { %v227_v0 = vld [vmem:[%s203_s28] sm:$0xff]  ;;  %v229_v1 = vld [vmem:[%s203_s28 + $0x10] sm:$0xff]  ;;  %v228_v2 = vld [vmem:[%s203_s28 + $0x8] sm:$0xff]  ;;  %s723_s25 = scalar_lea.vmem %s1024_s15, 128 }
  0x20   : > { %v246_v3 = vsel %vm245_vm0, %v227_v0, -inf  ;;  %v252_v4 = vsel %vm245_vm0, %v229_v1, -inf  ;;  %v230_v5 = vld [vmem:[%s203_s28 + $0x18] sm:$0xff]  ;;  %v249_v6 = vsel %vm245_vm0, %v228_v2, -inf  ;;  %v231_v8 = vld [vmem:[%s203_s28 + $0x20] sm:$0xff]  ;;  %v232_v9 = vld [vmem:[%s203_s28 + $0x28] sm:$0xff]  ;;  %p724_p13 = scmp.ne.s32.totalorder %s1024_s15, %s723_s25  ;;  %p731_p3 = scmp.lt.s32.totalorder %s729_s27, %s723_s25 }
  0x21   : > { %247 = vmax.xlane.f32.xlu0 %v246_v3  ;;  %253 = vmax.xlane.f32.xlu1 %v252_v4  ;;  %v255_v7 = vsel %vm245_vm0, %v230_v5, -inf  ;;  %v258_v10 = vsel %vm245_vm0, %v231_v8, -inf  ;;  %v261_v11 = vsel %vm245_vm0, %v232_v9, -inf  ;;  %v233_v12 = vld [vmem:[%s203_s28 + $0x30] sm:$0xff]  ;;  %v234_v13 = vld [vmem:[%s203_s28 + $0x38] sm:$0xff] }
  0x22   : > { %v264_v14 = vsel %vm245_vm0, %v233_v12, -inf  ;;  %v267_v15 = vsel %vm245_vm0, %v234_v13, -inf  ;;  %v235_v16 = vld [vmem:[%s203_s28 + $0x40] sm:$0x3f]  ;;  %p725_p0 = pnand %p724_p13, %p859_p4  ;;  %p732_p5 = por %p731_p3, %p730_p2 }
  0x23   : > { %v271_v17 = vsel %vm270_vm1, %v235_v16, -inf }
  0x24   : > { %p726_p1 = pneg %p725_p0 }
  0x25   : > { %250 = vmax.xlane.f32.xlu0 %v249_v6  ;;  %256 = vmax.xlane.f32.xlu1 %v255_v7 }
  0x26   : > { %p733_p6 = pnand %p732_p5, %p726_p1 }
  0x29   : > { %259 = vmax.xlane.f32.xlu0 %v258_v10  ;;  %262 = vmax.xlane.f32.xlu1 %v261_v11 }
  0x2d   : > { %265 = vmax.xlane.f32.xlu0 %v264_v14  ;;  %268 = vmax.xlane.f32.xlu1 %v267_v15 }
  0x31   : > { %272 = vmax.xlane.f32.xlu0 %v271_v17 }
  0xae   : > { %v893_v18 = vpop.xlane.xlu0 %247  ;;  %v895_v19 = vpop.xlane.xlu1 %253 }
  0xaf   : > { %v274_v20 = vsub.f32 %v227_v0, %v893_v18  ;;  %v276_v21 = vsub.f32 %v229_v1, %v895_v19 }
  0xb1   : > { %v283_v22 = vmul.f32 1.442695, %v274_v20  ;;  %v287_v23 = vmul.f32 1.442695, %v276_v21 }
  0xb2   : > { %v899_v24 = vpop.xlane.xlu0 %250  ;;  %v901_v25 = vpop.xlane.xlu1 %256 }
  0xb3   : > { %669 = vpow2.f32 %v283_v22  ;;  %v275_v26 = vsub.f32 %v228_v2, %v899_v24  ;;  %v277_v27 = vsub.f32 %v230_v5, %v901_v25  ;;  %v237_v22 = vld [vmem:[%s934_s3 + $0x8] sm:$0xff] }
  0xb4   : > { %671 = vpow2.f32 %v287_v23 }
  0xb5   : > { %v285_v28 = vmul.f32 1.442695, %v275_v26  ;;  %v289_v29 = vmul.f32 1.442695, %v277_v27 }
  0xb6   : > { %v905_v30 = vpop.xlane.xlu0 %259  ;;  %v907_v31 = vpop.xlane.xlu1 %262 }
  0xb7   : > { %673 = vpow2.f32 %v285_v28  ;;  %v278_v32 = vsub.f32 %v231_v8, %v905_v30  ;;  %v279_v33 = vsub.f32 %v232_v9, %v907_v31  ;;  %v236_v8 = vld [vmem:[%s934_s3] sm:$0xff] }
  0xb8   : > { %675 = vpow2.f32 %v289_v29 }
  0xb9   : > { %v291_v34 = vmul.f32 1.442695, %v278_v32  ;;  %v293_v35 = vmul.f32 1.442695, %v279_v33  ;;  %v240_v33 = vld [vmem:[%s934_s3 + $0x20] sm:$0xff] }
  0xba   : > { %v911_v36 = vpop.xlane.xlu0 %265  ;;  %v913_v37 = vpop.xlane.xlu1 %268 }
  0xbb   : > { %677 = vpow2.f32 %v291_v34  ;;  %v280_v38 = vsub.f32 %v233_v12, %v911_v36  ;;  %v281_v39 = vsub.f32 %v234_v13, %v913_v37 }
  0xbc   : > { %679 = vpow2.f32 %v293_v35 }
  0xbd   : > { %v670_v40 = vpop.eup %669  ;;  %v295_v41 = vmul.f32 1.442695, %v280_v38  ;;  %v297_v42 = vmul.f32 1.442695, %v281_v39 }
  0xbe   : > { %v672_v43 = vpop.eup %671  ;;  %v917_v44 = vpop.xlane.xlu0 %272  ;;  %v301_v45 = vsel %vm245_vm0, %v670_v40, 0.0 }
  0xbf   : > { %681 = vpow2.f32 %v295_v41  ;;  %v282_v46 = vsub.f32 %v235_v16, %v917_v44  ;;  %302 = vadd.xlane.f32.xlu1 %v301_v45  ;;  %v307_v47 = vsel %vm245_vm0, %v672_v43, 0.0  ;;  %v238_v16 = vld [vmem:[%s934_s3 + $0x10] sm:$0xff] }
  0xc0   : > { %683 = vpow2.f32 %v297_v42 }
  0xc1   : > { %v674_v48 = vpop.eup %673  ;;  %v299_v49 = vmul.f32 1.442695, %v282_v46 }
  0xc2   : > { %v676_v50 = vpop.eup %675  ;;  %v304_v51 = vsel %vm245_vm0, %v674_v48, 0.0 }
  0xc3   : > { %685 = vpow2.f32 %v299_v49  ;;  %308 = vadd.xlane.f32.xlu1 %v307_v47  ;;  %305 = vadd.xlane.f32.xlu0 %v304_v51  ;;  %v310_v52 = vsel %vm245_vm0, %v676_v50, 0.0  ;;  %v242_v49 = vld [vmem:[%s934_s3 + $0x30] sm:$0xff] }
  0xc5   : > { %v678_v53 = vpop.eup %677 }
  0xc6   : > { %v680_v54 = vpop.eup %679  ;;  %v313_v55 = vsel %vm245_vm0, %v678_v53, 0.0  ;;  %v241_v53 = vld [vmem:[%s934_s3 + $0x28] sm:$0xff] }
  0xc7   : > { %311 = vadd.xlane.f32.xlu0 %v310_v52  ;;  %314 = vadd.xlane.f32.xlu1 %v313_v55  ;;  %v316_v56 = vsel %vm245_vm0, %v680_v54, 0.0 }
  0xc9   : > { %v682_v57 = vpop.eup %681 }
  0xca   : > { %v684_v58 = vpop.eup %683  ;;  %v319_v59 = vsel %vm245_vm0, %v682_v57, 0.0 }
  0xcb   : > { %317 = vadd.xlane.f32.xlu0 %v316_v56  ;;  %320 = vadd.xlane.f32.xlu1 %v319_v59  ;;  %v322_v60 = vsel %vm245_vm0, %v684_v58, 0.0 }
  0xcd   : > { %v686_v61 = vpop.eup %685 }
  0xce   : > { %v325_v62 = vsel %vm270_vm1, %v686_v61, 0.0 }
  0xcf   : > { %323 = vadd.xlane.f32.xlu0 %v322_v60  ;;  %326 = vadd.xlane.f32.xlu1 %v325_v62 }
 0x14c   : > { %v303_v63 = vpop.xlane.xlu1 %302 }
 0x14d   : > { %687 = vlog2.f32 %v303_v63  ;;  %v244_v63 = vld [vmem:[%s934_s3 + $0x40] sm:$0x3f] }
 0x150   : > { %v309_v0 = vpop.xlane.xlu1 %308  ;;  %v306_v1 = vpop.xlane.xlu0 %305 }
 0x151   : > { %689 = vlog2.f32 %v309_v0 }
 0x152   : > { %691 = vlog2.f32 %v306_v1 }
 0x154   : > { %v315_v2 = vpop.xlane.xlu1 %314  ;;  %v312_v3 = vpop.xlane.xlu0 %311 }
 0x155   : > { %693 = vlog2.f32 %v315_v2 }
 0x156   : > { %695 = vlog2.f32 %v312_v3 }
 0x157   : > { %v688_v4 = vpop.eup %687 }
 0x158   : > { %v329_v5 = vmul.f32 0.6931472, %v688_v4  ;;  %v321_v6 = vpop.xlane.xlu1 %320  ;;  %v318_v7 = vpop.xlane.xlu0 %317  ;;  %v243_v4 = vld [vmem:[%s934_s3 + $0x38] sm:$0xff] }
 0x159   : > { %697 = vlog2.f32 %v321_v6 }
 0x15a   : > { %v346_v9 = vadd.f32 %v329_v5, %v893_v18  ;;  %699 = vlog2.f32 %v318_v7 }
 0x15b   : > { %v690_v10 = vpop.eup %689 }
 0x15c   : > { %v692_v11 = vpop.eup %691  ;;  %v355_v12 = vsub.f32 %v346_v9, %v236_v8  ;;  %v333_v13 = vmul.f32 0.6931472, %v690_v10  ;;  %v327_v14 = vpop.xlane.xlu1 %326 }
 0x15d   : > { %v324_v15 = vpop.xlane.xlu0 %323  ;;  %v331_v17 = vmul.f32 0.6931472, %v692_v11  ;;  %701 = vlog2.f32 %v327_v14 }
 0x15e   : > { %v939_v20 = vmax.f32 %v355_v12, 0.0  ;;  %v348_v21 = vadd.f32 %v333_v13, %v895_v19  ;;  %703 = vlog2.f32 %v324_v15  ;;  %v239_v19 = vld [vmem:[%s934_s3 + $0x18] sm:$0xff]  ;;  %v978_v15 = vstv %s226_s4 }
 0x15f   : > { %v694_v23 = vpop.eup %693  ;;  %v347_v18 = vadd.f32 %v331_v17, %v899_v24 }
 0x160   : > { %v696_v26 = vpop.eup %695  ;;  %v373_v27 = vsub.f32 0.0, %v939_v20  ;;  %v357_v28 = vsub.f32 %v348_v21, %v238_v16  ;;  %v337_v29 = vmul.f32 0.6931472, %v694_v23 }
 0x161   : > { %v356_v32 = vsub.f32 %v347_v18, %v237_v22  ;;  %v335_v34 = vmul.f32 0.6931472, %v696_v26 }
 0x162   : > { %v382_v35 = vmul.f32 1.442695, %v373_v27  ;;  %v946_v38 = vmax.f32 %v357_v28, 0.0  ;;  %v350_v39 = vadd.f32 %v337_v29, %v905_v30 }
 0x163   : > { %v698_v40 = vpop.eup %697  ;;  %v950_v41 = vmax.f32 %v356_v32, 0.0  ;;  %v349_v24 = vadd.f32 %v335_v34, %v901_v25  ;;  %v436_v25 = vlaneseq }
 0x164   : > { %v700_v42 = vpop.eup %699  ;;  %705 = vpow2.f32 %v382_v35  ;;  %v375_v43 = vsub.f32 0.0, %v946_v38  ;;  %v359_v45 = vsub.f32 %v350_v39, %v240_v33  ;;  %v341_v46 = vmul.f32 0.6931472, %v698_v40 }
 0x165   : > { %v374_v47 = vsub.f32 0.0, %v950_v41  ;;  %v358_v48 = vsub.f32 %v349_v24, %v239_v19  ;;  %v339_v50 = vmul.f32 0.6931472, %v700_v42  ;;  %v437_v7 = vshrl.u32 %v436_v25, 7 }
 0x166   : > { %v386_v51 = vmul.f32 1.442695, %v375_v43  ;;  %v956_v30 = vmax.f32 %v359_v45, 0.0  ;;  %v352_v52 = vadd.f32 %v341_v46, %v911_v36 }
 0x167   : > { %v702_v54 = vpop.eup %701  ;;  %v384_v55 = vmul.f32 1.442695, %v374_v47  ;;  %v960_v56 = vmax.f32 %v358_v48, 0.0  ;;  %v351_v57 = vadd.f32 %v339_v50, %v907_v31  ;;  %v439_v13 = vadd.s32 16, %v437_v7 }
 0x168   : > { %v704_v58 = vpop.eup %703  ;;  %707 = vpow2.f32 %v386_v51  ;;  %v377_v59 = vsub.f32 0.0, %v956_v30  ;;  %v361_v60 = vsub.f32 %v352_v52, %v242_v49  ;;  %v345_v61 = vmul.f32 0.6931472, %v702_v54 }
 0x169   : > { %709 = vpow2.f32 %v384_v55  ;;  %v376_v62 = vsub.f32 0.0, %v960_v56  ;;  %v360_v36 = vsub.f32 %v351_v57, %v241_v53  ;;  %v343_v0 = vmul.f32 0.6931472, %v704_v58 }
 0x16a   : > { %v390_v1 = vmul.f32 1.442695, %v377_v59  ;;  %v966_v2 = vmax.f32 %v361_v60, 0.0  ;;  %v354_v3 = vadd.f32 %v345_v61, %v917_v44  ;;  %v440_v22 = vadd.s32 24, %v437_v7 }
 0x16b   : > { %v388_v31 = vmul.f32 1.442695, %v376_v62  ;;  %v971_v5 = vmax.f32 %v360_v36, 0.0  ;;  %v353_v6 = vadd.f32 %v343_v0, %v913_v37  ;;  %v438_v37 = vadd.s32 8, %v437_v7 }
 0x16c   : > { %711 = vpow2.f32 %v390_v1  ;;  %v379_v8 = vsub.f32 0.0, %v966_v2  ;;  %v363_v9 = vsub.f32 %v354_v3, %v244_v63  ;;  %v441_v27 = vadd.s32 32, %v437_v7 }
 0x16d   : > { %713 = vpow2.f32 %v388_v31  ;;  %v378_v10 = vsub.f32 0.0, %v971_v5  ;;  %v362_v11 = vsub.f32 %v353_v6, %v243_v4  ;;  %v447_v29 = vadd.s32 %v978_v15, %v437_v7 }
 0x16e   : > { %v706_v12 = vpop.eup %705  ;;  %v394_v14 = vmul.f32 1.442695, %v379_v8  ;;  %v976_v44 = vmax.f32 %v363_v9, 0.0  ;;  %v449_v32 = vadd.s32 %v978_v15, %v439_v13  ;;  %v442_v34 = vadd.s32 40, %v437_v7 }
 0x16f   : > { %v400_v16 = vsub.f32 1.0, %v706_v12  ;;  %v392_v17 = vmul.f32 1.442695, %v378_v10  ;;  %v980_v21 = vmax.f32 %v362_v11, 0.0  ;;  %v443_v24 = vadd.s32 48, %v437_v7 }
 0x170   : > { %715 = vpow2.f32 %v394_v14  ;;  %v381_v23 = vsub.f32 0.0, %v976_v44  ;;  %v448_v42 = vadd.s32 %v978_v15, %v438_v37  ;;  %v450_v45 = vadd.s32 %v978_v15, %v440_v22 }
 0x171   : > { %v409_v18 = vmax.f32 %v400_v16, 0.0  ;;  %717 = vpow2.f32 %v392_v17  ;;  %v380_v26 = vsub.f32 0.0, %v980_v21  ;;  %v451_v47 = vadd.s32 %v978_v15, %v441_v27 }
 0x172   : > { %v708_v28 = vpop.eup %707  ;;  %v398_v33 = vmul.f32 1.442695, %v381_v23  ;;  %vm456_vm3 = vcmp.lt.s32.totalorder %v447_v29, 70  ;;  %vm458_vm4 = vcmp.lt.s32.totalorder %v449_v32, 70  ;;  %v452_v54 = vadd.s32 %v978_v15, %v442_v34 }
 0x173   : > { %v710_v35 = vpop.eup %709  ;;  %v418_v39 = vmul.f32 %v409_v18, %v409_v18  ;;  %v402_v19 = vsub.f32 1.0, %v708_v28  ;;  %v396_v40 = vmul.f32 1.442695, %v380_v26  ;;  %v453_v25 = vadd.s32 %v978_v15, %v443_v24 }
 0x174   : > { %v401_v43 = vsub.f32 1.0, %v710_v35  ;;  %719 = vpow2.f32 %v398_v33  ;;  %vm457_vm5 = vcmp.lt.s32.totalorder %v448_v42, 70  ;;  %vm459_vm6 = vcmp.lt.s32.totalorder %v450_v45, 70 }
 0x175   : > { %v411_v46 = vmax.f32 %v402_v19, 0.0  ;;  %721 = vpow2.f32 %v396_v40  ;;  %v427_v49 = vmul.f32 %v418_v39, %v939_v20  ;;  %v444_v60 = vadd.s32 56, %v437_v7 }
 0x176   : > { %v712_v48 = vpop.eup %711  ;;  %v410_v50 = vmax.f32 %v401_v43, 0.0  ;;  %vm460_vm7 = vcmp.lt.s32.totalorder %v451_v47, 70  ;;  %v445_v63 = vadd.s32 64, %v437_v7  ;;  %vm461_vm8 = vcmp.lt.s32.totalorder %v452_v54, 70 }
 0x177   : > { %v714_v51 = vpop.eup %713  ;;  %v420_v52 = vmul.f32 %v411_v46, %v411_v46  ;;  %v404_v53 = vsub.f32 1.0, %v712_v48  ;;  %v465_v20 = vsel %vm456_vm3, %v427_v49, 0.0  ;;  %vm462_vm9 = vcmp.lt.s32.totalorder %v453_v25, 70 }
 0x178   : > { %v419_v55 = vmul.f32 %v410_v50, %v410_v50  ;;  %v403_v57 = vsub.f32 1.0, %v714_v51  ;;  %v476_v8 = vsel %vm475_vm2, %v465_v20, 0.0  ;;  %v454_v14 = vadd.s32 %v978_v15, %v444_v60 }
 0x179   : > { %v429_v58 = vmul.f32 %v420_v52, %v946_v38  ;;  %v413_v59 = vmax.f32 %v404_v53, 0.0 }
 0x17a   : > { %v716_v61 = vpop.eup %715  ;;  %v428_v62 = vmul.f32 %v419_v55, %v950_v41  ;;  %v412_v36 = vmax.f32 %v403_v57, 0.0  ;;  %vm463_vm10 = vcmp.lt.s32.totalorder %v454_v14, 70 }
 0x17b   : > { %v718_v0 = vpop.eup %717  ;;  %v422_v1 = vmul.f32 %v413_v59, %v413_v59  ;;  %v406_v3 = vsub.f32 1.0, %v716_v61  ;;  %v467_v4 = vsel %vm458_vm4, %v429_v58, 0.0 }
 0x17c   : > { %v466_v31 = vsel %vm457_vm5, %v428_v62, 0.0  ;;  %v421_v38 = vmul.f32 %v412_v36, %v412_v36  ;;  %v405_v6 = vsub.f32 1.0, %v718_v0  ;;  %v479_v17 = vsel %vm475_vm2, %v467_v4, 0.0 }
 0x17d   : > { %v477_v9 = vsel %vm475_vm2, %v466_v31, 0.0  ;;  %v431_v10 = vmul.f32 %v422_v1, %v956_v30  ;;  %v415_v41 = vmax.f32 %v406_v3, 0.0 }
 0x17e   : > { %v720_v11 = vpop.eup %719  ;;  %v478_v7 = vadd.f32 %v477_v9, %v476_v8  ;;  %v430_v12 = vmul.f32 %v421_v38, %v960_v56  ;;  %v414_v13 = vmax.f32 %v405_v6, 0.0  ;;  %v455_v56 = vadd.s32 %v978_v15, %v445_v63 }
 0x17f   : > { %v722_v16 = vpop.eup %721  ;;  %v408_v37 = vsub.f32 1.0, %v720_v11  ;;  %v424_v22 = vmul.f32 %v415_v41, %v415_v41  ;;  %v469_v23 = vsel %vm460_vm7, %v431_v10, 0.0 }
 0x180   : > { %v468_v18 = vsel %vm459_vm6, %v430_v12, 0.0  ;;  %v423_v26 = vmul.f32 %v414_v13, %v414_v13  ;;  %v407_v27 = vsub.f32 1.0, %v722_v16  ;;  %v480_v30 = vadd.f32 %v479_v17, %v478_v7 }
 0x181   : > { %v417_v28 = vmax.f32 %v408_v37, 0.0  ;;  %v433_v29 = vmul.f32 %v424_v22, %v966_v2  ;;  %v481_v32 = vsel %vm475_vm2, %v468_v18, 0.0  ;;  %v483_v19 = vsel %vm475_vm2, %v469_v23, 0.0 }
 0x182   : > { %v432_v33 = vmul.f32 %v423_v26, %v971_v5  ;;  %v416_v34 = vmax.f32 %v407_v27, 0.0  ;;  %v482_v35 = vadd.f32 %v481_v32, %v480_v30  ;;  %vm464_vm11 = vcmp.lt.s32.totalorder %v455_v56, 70 }
 0x183   : > { %v426_v39 = vmul.f32 %v417_v28, %v417_v28  ;;  %v471_v42 = vsel %vm462_vm9, %v433_v29, 0.0 }
 0x184   : > { %v425_v40 = vmul.f32 %v416_v34, %v416_v34  ;;  %v470_v24 = vsel %vm461_vm8, %v432_v33, 0.0  ;;  %v484_v43 = vadd.f32 %v483_v19, %v482_v35  ;;  %v487_v46 = vsel %vm475_vm2, %v471_v42, 0.0 }
 0x185   : > { %v435_v45 = vmul.f32 %v426_v39, %v976_v44  ;;  %v485_v2 = vsel %vm475_vm2, %v470_v24, 0.0 }
 0x186   : > { %v434_v15 = vmul.f32 %v425_v40, %v980_v21  ;;  %v486_v5 = vadd.f32 %v485_v2, %v484_v43 }
 0x187   : > { %v473_v48 = vsel %vm464_vm11, %v435_v45, 0.0 }
 0x188   : > { %v472_v47 = vsel %vm463_vm10, %v434_v15, 0.0  ;;  %v488_v49 = vadd.f32 %v487_v46, %v486_v5  ;;  %v492_v52 = vsel %vm491_vm12, %v473_v48, 0.0 }
 0x189   : > { %v489_v50 = vsel %vm475_vm2, %v472_v47, 0.0 }
 0x18a   : > { %v490_v51 = vadd.f32 %v489_v50, %v488_v49 }
 0x18c   : > { %v493_v44 = vadd.f32 %v492_v52, %v490_v51 }
 0x18e   : > { %494 = vadd.xlane.f32.xlu0 %v493_v44 }
 0x21b   : > { %v495_v53 = vpop.xlane.xlu0 %494 }
 0x21c   : > { %v496_v54 = vrot.slane %v495_v53, 4 }
 0x21e   : > { %v497_v25 = vadd.f32 %v496_v54, %v495_v53 }
 0x220   : > { %v498_v55 = vrot.slane %v497_v25, 2 }
 0x222   : > { %v499_v21 = vadd.f32 %v498_v55, %v497_v25 }
 0x224   : > { %v500_v57 = vrot.slane %v499_v21, 1 }
 0x226   : > { %v501_v58 = vadd.f32 %v500_v57, %v499_v21 }
 0x228   : > { %611 = vpush %v501_v58 }
 0x259   : > { %s612_s16 = spop %611 }
 0x25a   : > { %v503_v59 = vstv %s612_s16 }
 0x25b   : > { %505 = vst [vmem:[%s195_s8] sm:$0xff] %v503_v59 }
 0x25c   : > { %736 = shalt.err (!%p733_p6)
}
 0x25d   : > { %s737_s28 = scalar_lea.hbm %s1022_s23, 128  ;;  %s741_s3 = scalar_lea.hbm %s1071_s2, 256 }
 0x25e   : > { %p738_p7 = scmp.ne.s32.totalorder %s1022_s23, %s737_s28  ;;  %p742_p11 = scmp.lt.u32.totalorder %s1022_s23, %s1071_s2 }
 0x25f   : > { %p743_p12 = scmp.lt.u32.totalorder %s741_s3, %s737_s28  ;;  %p745_p0 = scmp.lt.u32.totalorder %s737_s28, %s1022_s23 }
 0x260   : > { %p739_p9 = pnand %p738_p7, %p859_p4 }
 0x261   : > { %p744_p13 = por %p743_p12, %p742_p11 }
 0x262   : > { %p740_p10 = pneg %p739_p9 }
 0x263   : > { %p746_p1 = por %p745_p0, %p744_p13 }
 0x265   : > { %p747_p2 = pnand %p746_p1, %p740_p10 }
 0x267   : > { %750 = shalt.err (!%p747_p2)
}
 0x268   : > { %613 = dma.vmem_to_hbm [thread:$0]  (%p859_p4), %s1024_s15, 128, %s1022_s23, %s507_s24  }
 0x269 PF: > { %p619_p3 = scmp.ge.s32.totalorder %s801_s14, 2  ;;  %s532_s6 = sand.u32 1, %s781_s9  }
 0x26a   : > { %s533_s7 = scalar_lea.sflag [#allocation3], %s532_s6 }
 0x26b   : > { %p616_p5 = pnand %p619_p3, %p866_p8 }
 0x26d   : > { %776 = dma.done.wait (!%p616_p5), %s533_s7, 128  }
 0x26e   : > { %778 = vsyncadd (!%p616_p5), %s533_s7, 4294967168  ;;  %s15_s14 = sadd.s32 1, %s801_s14   ;;  %s1074_s9 = smov %s785_s10 }
 0x26f   : > { %p12_p6 = scmp.ge.s32.totalorder %s15_s14, 4   ;;  %s1075_s10 = smov %s789_s11 }
 0x270   : > { %s1076_s11 = smov %s872_s22  ;;  %s1077_s12 = smov %s797_s13 }
 0x271   : > { %s1078_s13 = smov %s1080_s17  ;;  %14 = sbr.rel (!%p12_p6) target bundleno = 4 (0x4), region = 70 }
 0x278   :  { %538 = vsyncpa [#allocation3], 1 }
 0x279   :  { %540 = vsyncpa [#allocation3 + $0x1], 1 }

</bundles_post_ra>
